<compile_context>
chip_gen: v7x
topology: tpu7x:2x2x1
jax: 0.10.0
libtpu: 0.0.40
codegen_flags: <defaults>
</compile_context>

<pallas_src>
import jax
import jax.numpy as jnp
from jax import lax
from jax.experimental import pallas as pl
from jax.experimental.pallas import tpu as pltpu


def _round_up(v, m):
    return ((v + m - 1) // m) * m


def _vmem_budget_bytes():
    """Per-core VMEM budget with headroom (generation-aware)."""
    cap = 64 * 1024 * 1024  # conservative fallback (v7x per-TC VMEM)
    try:
        info = pltpu.get_tpu_info()
        cap = int(getattr(info, "vmem_capacity_bytes", cap))
    except Exception:
        pass
    return (cap * 3) // 4  # leave ~25% headroom for Mosaic scratch / semaphores


def _build_normalized_adjacency(edge_index, num_nodes, n_pad):
    """Dense A_hat = D^{-1/2}(A+I)D^{-1/2} (PyG gcn_norm), built at padded size, f32.

    Rows/cols >= num_nodes are zero, so padding never affects real outputs.
    """
    src = edge_index[0]
    dst = edge_index[1]
    loops = jnp.arange(num_nodes, dtype=edge_index.dtype)
    src = jnp.concatenate([src, loops])
    dst = jnp.concatenate([dst, loops])
    ones = jnp.ones(src.shape, jnp.float32)
    deg = jnp.zeros((n_pad,), jnp.float32).at[dst].add(ones)
    dinv = jnp.where(deg > 0, lax.rsqrt(deg), jnp.zeros_like(deg))
    vals = dinv[dst] * dinv[src]
    return jnp.zeros((n_pad, n_pad), jnp.float32).at[dst, src].add(vals)


# ---------------------------------------------------------------------------
# Fused small-graph path: all layers in one pallas_call, A_hat resident in VMEM.
# ---------------------------------------------------------------------------
def _fused_layers_kernel(a_ref, x_ref, w_ref, b_ref, o_ref, h_ref):
    """Layer l (grid axis 0):  h <- A_hat @ (h @ W_l) + b_l.

    bf16 operands on both MXU matmuls, f32 accumulation; bias add in f32
    (v5e's VPU has no bf16).  A_hat / x have constant block indices, so they
    are DMA'd from HBM exactly once for the whole stack of layers.
    """
    l = pl.program_id(0)

    @pl.when(l == 0)
    def _():
        h_ref[...] = x_ref[...]

    xw = jnp.dot(h_ref[...], w_ref[...], preferred_element_type=jnp.float32)
    agg = jnp.dot(a_ref[...], xw.astype(jnp.bfloat16),
                  preferred_element_type=jnp.float32)
    out = agg + b_ref[...]
    h_ref[...] = out.astype(h_ref.dtype)

    @pl.when(l == pl.num_programs(0) - 1)
    def _():
        o_ref[...] = out.astype(o_ref.dtype)


def _gcn_fused_layers(a_hat_bf16, x_pad_bf16, w_stack_bf16, b_stack_f32, vmem_budget):
    n_pad, c_pad = x_pad_bf16.shape
    num_layers = w_stack_bf16.shape[0]
    return pl.pallas_call(
        _fused_layers_kernel,
        out_shape=jax.ShapeDtypeStruct((n_pad, c_pad), jnp.float32),
        grid=(num_layers,),
        in_specs=[
            pl.BlockSpec((n_pad, n_pad), lambda l: (0, 0)),            # A_hat (DMA once)
            pl.BlockSpec((n_pad, c_pad), lambda l: (0, 0)),            # X (DMA once)
            pl.BlockSpec((None, c_pad, c_pad), lambda l: (l, 0, 0)),   # W_l
            pl.BlockSpec((None, 1, c_pad), lambda l: (l, 0, 0)),       # b_l
        ],
        out_specs=pl.BlockSpec((n_pad, c_pad), lambda l: (0, 0)),
        scratch_shapes=[pltpu.VMEM((n_pad, c_pad), jnp.bfloat16)],     # persistent h
        compiler_params=pltpu.CompilerParams(
            dimension_semantics=("arbitrary",),   # layers are sequential
            vmem_limit_bytes=int(vmem_budget),
        ),
    )(a_hat_bf16, x_pad_bf16, w_stack_bf16, b_stack_f32)


# ---------------------------------------------------------------------------
# Tiled large-graph path: XW hoisted to the wrapper; (M parallel, K reduction)
# grid over the bf16 A_hat stream with an f32 accumulator.
# ---------------------------------------------------------------------------
def _agg_tiled_kernel(a_ref, xw_ref, b_ref, o_ref, acc_ref):
    k = pl.program_id(1)

    @pl.when(k == 0)
    def _():
        acc_ref[...] = jnp.zeros_like(acc_ref)

    acc_ref[...] += jnp.dot(a_ref[...], xw_ref[...],
                            preferred_element_type=jnp.float32)

    @pl.when(k == pl.num_programs(1) - 1)
    def _():
        o_ref[...] = (acc_ref[...] + b_ref[...]).astype(o_ref.dtype)


def _gcn_aggregate_tiled(a_hat_bf16, xw_bf16, b_row_f32, tile_m, tile_k, vmem_budget):
    n_pad = a_hat_bf16.shape[0]
    c_pad = xw_bf16.shape[1]
    grid = (n_pad // tile_m, n_pad // tile_k)
    return pl.pallas_call(
        _agg_tiled_kernel,
        out_shape=jax.ShapeDtypeStruct((n_pad, c_pad), jnp.float32),
        grid=grid,
        in_specs=[
            pl.BlockSpec((tile_m, tile_k), lambda i, k: (i, k)),   # A_hat tile (bf16)
            pl.BlockSpec((tile_k, c_pad), lambda i, k: (k, 0)),    # XW K-slab (bf16)
            pl.BlockSpec((1, c_pad), lambda i, k: (0, 0)),         # bias (f32)
        ],
        out_specs=pl.BlockSpec((tile_m, c_pad), lambda i, k: (i, 0)),
        scratch_shapes=[pltpu.VMEM((tile_m, c_pad), jnp.float32)],
        compiler_params=pltpu.CompilerParams(
            dimension_semantics=("parallel", "arbitrary"),  # rows shard across TCs (v7x)
            vmem_limit_bytes=int(vmem_budget),
        ),
    )(a_hat_bf16, xw_bf16, b_row_f32)


# ---------------------------------------------------------------------------
# Wrapper: GraphDecoder.forward
# ---------------------------------------------------------------------------
def graph_decoder_forward(x, edge_index, params, *, force_tiled=False,
                          tile_m=None, tile_k=None):
    """GraphDecoder.forward: x -> GCNConv_0 -> ... -> GCNConv_{L-1}.

    params: list of (W, b) with W: (c_in, c_out), b: (c_out,).
    """
    n, c_in = x.shape
    out_dtype = x.dtype
    num_layers = len(params)
    c_out_final = params[-1][0].shape[1]
    budget = _vmem_budget_bytes()

    # Lane-dense feature width (multiple of 128) shared by all layers.
    widths = [c_in] + [w.shape[1] for w, _ in params]
    c_pad = _round_up(max(max(widths), 128), 128)

    # Pad all weights / biases to a uniform (c_pad, c_pad)/(c_pad,). Zero padding
    # keeps the math exact (padded feature columns stay zero, padded node rows
    # only ever multiply zero adjacency columns).
    w_pads, b_pads = [], []
    for w, b in params:
        ci, co = w.shape
        w_pads.append(jnp.zeros((c_pad, c_pad), jnp.float32)
                      .at[:ci, :co].set(w.astype(jnp.float32)))
        b_pads.append(jnp.zeros((c_pad,), jnp.float32)
                      .at[:co].set(b.astype(jnp.float32)))

    # --- small-graph fused path -------------------------------------------
    n_pad_f = _round_up(n, 128)
    fused_vmem = (
        2 * n_pad_f * n_pad_f * 2      # A_hat bf16 (double-buffered)
        + 2 * n_pad_f * c_pad * 2      # x bf16
        + 2 * c_pad * c_pad * 2        # W block bf16
        + 2 * n_pad_f * c_pad * 4      # output f32
        + n_pad_f * c_pad * 2          # h scratch bf16
        + 4 * n_pad_f * c_pad * 4      # matmul temporaries (xw / agg) slack
    )

    if (not force_tiled) and fused_vmem <= budget // 2:
        n_pad = n_pad_f
        a_hat = _build_normalized_adjacency(edge_index, n, n_pad).astype(jnp.bfloat16)
        x_pad = (jnp.zeros((n_pad, c_pad), jnp.bfloat16)
                 .at[:n, :c_in].set(x.astype(jnp.bfloat16)))
        w_stack = jnp.stack(w_pads).astype(jnp.bfloat16)             # (L, c_pad, c_pad)
        b_stack = jnp.stack(b_pads).reshape(num_layers, 1, c_pad)    # (L, 1, c_pad) f32
        h = _gcn_fused_layers(a_hat, x_pad, w_stack, b_stack, budget)
    else:
        # --- tiled path -----------------------------------------------------
        if tile_m is None:
            tile_m = 256
        tile_m = max(128, _round_up(int(tile_m), 128))
        if tile_k is None:
            # ~1/4 of the VMEM budget for the (double-buffered) bf16 A tile.
            tile_k = (budget // 4) // (tile_m * 2)
        tile_k = max(tile_m, (int(tile_k) // tile_m) * tile_m)
        tile_k = min(tile_k, _round_up(n, tile_m))
        n_pad = _round_up(n, tile_k)   # tile_k is a multiple of tile_m

        a_hat = _build_normalized_adjacency(edge_index, n, n_pad).astype(jnp.bfloat16)
        w_bf = [wp.astype(jnp.bfloat16) for wp in w_pads]
        b_rows = [bp.reshape(1, c_pad) for bp in b_pads]

        h = (jnp.zeros((n_pad, c_pad), jnp.float32)
             .at[:n, :c_in].set(x.astype(jnp.float32)))
        for wl, bl in zip(w_bf, b_rows):
            # X@W hoisted: computed once per layer, not once per row tile.
            xw = jnp.dot(h.astype(jnp.bfloat16), wl,
                         preferred_element_type=jnp.float32).astype(jnp.bfloat16)
            h = _gcn_aggregate_tiled(a_hat, xw, bl, tile_m, tile_k, budget)

    return h[:n, :c_out_final].astype(out_dtype)


# ---------------------------------------------------------------------------
# Test
# ---------------------------------------------------------------------------
if __name__ == "__main__":
    key = jax.random.PRNGKey(0)
    k_x, k_e1, k_e2, k_w, k_x2, k_e3, k_e4 = jax.random.split(key, 7)

    def make_problem(kx, ke1, ke2, kw, num_nodes, num_und_edges, dims):
        x = jax.random.normal(kx, (num_nodes, dims[0]), jnp.float32)
        s = jax.random.randint(ke1, (num_und_edges,), 0, num_nodes)
        d = jax.random.randint(ke2, (num_und_edges,), 0, num_nodes)
        edge_index = jnp.stack(
            [jnp.concatenate([s, d]), jnp.concatenate([d, s])]
        ).astype(jnp.int32)
        wkeys = jax.random.split(kw, 2 * (len(dims) - 1))
        params = []
        for i in range(len(dims) - 1):
            w = 0.1 * jax.random.normal(wkeys[2 * i], (dims[i], dims[i + 1]), jnp.float32)
            b = 0.1 * jax.random.normal(wkeys[2 * i + 1], (dims[i + 1],), jnp.float32)
            params.append((w, b))
        return x, edge_index, params

    def reference(x, edge_index, params):
        n = x.shape[0]
        a = _build_normalized_adjacency(edge_index, n, n)
        h = x
        for w, b in params:
            h = a @ (h @ w) + b
        return h

    # GraphDecoder config: in=32, hidden=32, out=16, num_layers=3.
    dims = [32, 32, 32, 16]

    # Case 1: small graph -> fused all-layers kernel (A_hat resident in VMEM).
    x1, e1, p1 = make_problem(k_x, k_e1, k_e2, k_w, 64, 128, dims)
    y1 = graph_decoder_forward(x1, e1, p1)
    jax.block_until_ready(y1)
    r1 = reference(x1, e1, p1)
    assert y1.shape == (64, 16)
    err1 = float(jnp.max(jnp.abs(y1 - r1)))
    assert err1 < 5e-2, f"fused path max err {err1}"

    # Case 2: force the tiled path with multiple row tiles AND multiple K tiles
    # (exercises the accumulator init/finalize and multi-tile index maps).
    x2, e2, p2 = make_problem(k_x2, k_e3, k_e4, k_w, 200, 400, dims)
    y2 = graph_decoder_forward(x2, e2, p2, force_tiled=True, tile_m=128, tile_k=128)
    jax.block_until_ready(y2)
    r2 = reference(x2, e2, p2)
    assert y2.shape == (200, 16)
    err2 = float(jnp.max(jnp.abs(y2 - r2)))
    assert err2 < 5e-2, f"tiled path max err {err2}"

    print("KERNEL_OK")
</pallas_src>

<mosaic_0001>
module attributes {stable_mosaic.version = 11 : i64} {
  func.func @_fused_layers_kernel(%arg0: i32, %arg1: memref<128x128xbf16, #tpu.memory_space<vmem>>, %arg2: memref<128x128xbf16, #tpu.memory_space<vmem>>, %arg3: memref<1x128x128xbf16, #tpu.memory_space<vmem>>, %arg4: memref<1x1x128xf32, #tpu.memory_space<vmem>>, %arg5: memref<128x128xf32, #tpu.memory_space<vmem>>, %arg6: memref<128x128xbf16, #tpu.memory_space<vmem>>) attributes {dimension_semantics = [#tpu.dimension_semantics<arbitrary>], iteration_bounds = array<i64: 3>, scalar_prefetch = 0 : i64, scratch_operands = 1 : i64, tpu.core_type = #tpu.core_type<tc>, window_params = [{pipeline_mode = #tpu.pipeline_mode<synchronous>, transform_indices = @transform_0, window_bounds = array<i64: 128, 128>}, {pipeline_mode = #tpu.pipeline_mode<synchronous>, transform_indices = @transform_1, window_bounds = array<i64: 128, 128>}, {transform_indices = @transform_2, window_bounds = array<i64: 1, 128, 128>}, {transform_indices = @transform_3, window_bounds = array<i64: 1, 1, 128>}, {pipeline_mode = #tpu.pipeline_mode<synchronous>, transform_indices = @transform_4, window_bounds = array<i64: 128, 128>}]} {
    %c0_i32 = arith.constant 0 : i32
    %0 = arith.cmpi eq, %arg0, %c0_i32 : i32
    %1 = arith.extui %0 : i1 to i32
    %c0_i32_0 = arith.constant 0 : i32
    %2 = arith.cmpi ne, %1, %c0_i32_0 : i32
    scf.if %2 {
      %c0_14 = arith.constant 0 : index
      %c0_15 = arith.constant 0 : index
      %19 = vector.load %arg2[%c0_14, %c0_15] : memref<128x128xbf16, #tpu.memory_space<vmem>>, vector<128x128xbf16>
      %c0_16 = arith.constant 0 : index
      %c0_17 = arith.constant 0 : index
      %20 = vector.load %arg6[%c0_16, %c0_17] : memref<128x128xbf16, #tpu.memory_space<vmem>>, vector<128x128xbf16>
      tpu.vector_store %arg6[%c0_16, %c0_17], %19 {strides = array<i32>} : memref<128x128xbf16, #tpu.memory_space<vmem>>, vector<128x128xbf16>,
    } else {
    }
    %c0 = arith.constant 0 : index
    %c0_1 = arith.constant 0 : index
    %3 = vector.load %arg6[%c0, %c0_1] : memref<128x128xbf16, #tpu.memory_space<vmem>>, vector<128x128xbf16>
    %c0_2 = arith.constant 0 : index
    %c0_3 = arith.constant 0 : index
    %c0_4 = arith.constant 0 : index
    %4 = vector.load %arg3[%c0_2, %c0_3, %c0_4] : memref<1x128x128xbf16, #tpu.memory_space<vmem>>, vector<1x128x128xbf16>
    %5 = vector.shape_cast %4 : vector<1x128x128xbf16> to vector<128x128xbf16>
    %cst = arith.constant dense<0.000000e+00> : vector<128x128xf32>
    %6 = tpu.matmul %3, %5, %cst {dimension_numbers = #tpu.dot_dimension_numbers<[1], [0], [0], [1], [0, 0, 1, 1], [], []>} : vector<128x128xbf16>, vector<128x128xbf16>, vector<128x128xf32> -> vector<128x128xf32>
    %c0_5 = arith.constant 0 : index
    %c0_6 = arith.constant 0 : index
    %7 = vector.load %arg1[%c0_5, %c0_6] : memref<128x128xbf16, #tpu.memory_space<vmem>>, vector<128x128xbf16>
    %8 = arith.truncf %6 : vector<128x128xf32> to vector<128x128xbf16>
    %cst_7 = arith.constant dense<0.000000e+00> : vector<128x128xf32>
    %9 = tpu.matmul %7, %8, %cst_7 {dimension_numbers = #tpu.dot_dimension_numbers<[1], [0], [0], [1], [0, 0, 1, 1], [], []>} : vector<128x128xbf16>, vector<128x128xbf16>, vector<128x128xf32> -> vector<128x128xf32>
    %c0_8 = arith.constant 0 : index
    %c0_9 = arith.constant 0 : index
    %c0_10 = arith.constant 0 : index
    %10 = vector.load %arg4[%c0_8, %c0_9, %c0_10] : memref<1x1x128xf32, #tpu.memory_space<vmem>>, vector<1x1x128xf32>
    %11 = vector.shape_cast %10 : vector<1x1x128xf32> to vector<1x128xf32>
    %12 = vector.broadcast %11 : vector<1x128xf32> to vector<128x128xf32>
    %13 = arith.addf %9, %12 : vector<128x128xf32>
    %14 = arith.truncf %13 : vector<128x128xf32> to vector<128x128xbf16>
    %c0_11 = arith.constant 0 : index
    %c0_12 = arith.constant 0 : index
    %15 = vector.load %arg6[%c0_11, %c0_12] : memref<128x128xbf16, #tpu.memory_space<vmem>>, vector<128x128xbf16>
    tpu.vector_store %arg6[%c0_11, %c0_12], %14 {strides = array<i32>} : memref<128x128xbf16, #tpu.memory_space<vmem>>, vector<128x128xbf16>,
    %c2_i32 = arith.constant 2 : i32
    %16 = arith.cmpi eq, %arg0, %c2_i32 : i32
    %17 = arith.extui %16 : i1 to i32
    %c0_i32_13 = arith.constant 0 : i32
    %18 = arith.cmpi ne, %17, %c0_i32_13 : i32
    scf.if %18 {
      %c0_14 = arith.constant 0 : index
      %c0_15 = arith.constant 0 : index
      %19 = vector.load %arg5[%c0_14, %c0_15] : memref<128x128xf32, #tpu.memory_space<vmem>>, vector<128x128xf32>
      tpu.vector_store %arg5[%c0_14, %c0_15], %13 {strides = array<i32>} : memref<128x128xf32, #tpu.memory_space<vmem>>, vector<128x128xf32>,
    } else {
    }
    return
  }
  func.func @transform_0(%arg0: i32) -> (i32, i32) {
    %c0_i32 = arith.constant 0 : i32
    %c0_i32_0 = arith.constant 0 : i32
    %c0_i32_1 = arith.constant 0 : i32
    return %c0_i32, %c0_i32_0 : i32, i32
  }
  func.func @transform_1(%arg0: i32) -> (i32, i32) {
    %c0_i32 = arith.constant 0 : i32
    %c0_i32_0 = arith.constant 0 : i32
    %c0_i32_1 = arith.constant 0 : i32
    return %c0_i32, %c0_i32_0 : i32, i32
  }
  func.func @transform_2(%arg0: i32) -> (i32, i32, i32) {
    %c0_i32 = arith.constant 0 : i32
    %c0_i32_0 = arith.constant 0 : i32
    %c0_i32_1 = arith.constant 0 : i32
    return %arg0, %c0_i32, %c0_i32_0 : i32, i32, i32
  }
  func.func @transform_3(%arg0: i32) -> (i32, i32, i32) {
    %c0_i32 = arith.constant 0 : i32
    %c0_i32_0 = arith.constant 0 : i32
    %c0_i32_1 = arith.constant 0 : i32
    return %arg0, %c0_i32, %c0_i32_0 : i32, i32, i32
  }
  func.func @transform_4(%arg0: i32) -> (i32, i32) {
    %c0_i32 = arith.constant 0 : i32
    %c0_i32_0 = arith.constant 0 : i32
    %c0_i32_1 = arith.constant 0 : i32
    return %c0_i32, %c0_i32_0 : i32, i32
  }
}

</mosaic_0001>

<bundles_post_ra>
// kernel: tpu_custom_call.1
= control target key start
LH: loop header
LB: loop body
LE: loop exit
PB: predicated region body
PF: predicated region fallthrough
CT: control target
= control target key end

     0   :  { %9 = vsyncpa [#allocation4], 0  ;;  %s1452_s0 = inlined_call_operand.hbm [shape: bf16[128,128], index: 0, kind: input, shape index: {}]   ;;  %s1453_s1 = inlined_call_operand.hbm [shape: bf16[128,128], index: 1, kind: input, shape index: {}]   ;;  %s1454_s2 = inlined_call_operand.hbm [shape: bf16[3,128,128], index: 2, kind: input, shape index: {}]   ;;  %s1455_s3 = inlined_call_operand.vmem [shape: f32[3,1,128], index: 3, kind: input, shape index: {}]   ;;  %s1456_s4 = inlined_call_operand.hbm [shape: f32[128,128], index: 4, kind: output, shape index: {}]  }
   0x1   :  { %10 = vsyncpa [#allocation7], 0 }
   0x2   :  { %11 = vsyncpa [#allocation5], 0  ;;  %s1218_s15 = smov 0   ;;  %s1220_s16 = smov 0  }
   0x3   :  { %s1222_s17 = smov 0   ;;  %s1224_s18 = smov 0  }
   0x4 LB: > { %s1237_s19 = sadd.s32 4294967295, %s1183_s18   ;;  %s1240_s20 = sadd.s32 1, %s1183_s18   ;;  %s1183_s18 = sphi %s1224_s18, %s1477_s18   ;;  %s1179_s17 = sphi %s1222_s17, %s1476_s17   ;;  %s1175_s16 = sphi %s1220_s16, %s1475_s16   ;;  %s1171_s15 = sphi %s1218_s15, %s1474_s15  }
   0x5   : > { %s63_s21 = ssub.s32 %s1183_s18, %s1240_s20  ;;  %s66_s22 = sadd.s32 1, %s1179_s17 }
   0x6   : > { %p64_p0 = scmp.eq.s32.totalorder %s63_s21, 0  ;;  %p73_p1 = scmp.ne.s32.totalorder %s1179_s17, %s1175_s16 }
   0x7   : > { %p74_p2 = scmp.eq.s32.totalorder %s1183_s18, 0  ;;  %p79_p3 = scmp.ne.s32.totalorder %s1175_s16, %s1171_s15 }
   0x8   : > { %s1250_s23 = scalar_select %p64_p0, %s1179_s17, %s66_s22  }
   0x9   : > { %p1252_p4 = por %p74_p2, %p73_p1  ;;  %p1457_p5 = scmp.eq.s32.totalorder %s1237_s19, 0 }
   0xa   : > { %p791_p6 = scmp.ge.s32.totalorder %s1183_s18, 1  ;;  %p137_p7 = scmp.lt.s32.totalorder %s1183_s18, 4 }
   0xb   : > { %p1261_p8 = por %p1457_p5, %p79_p3  ;;  %s1185_s27 = smov [#allocation3]  }
   0xc   : > { %p1266_p10 = pnand %p791_p6, %p137_p7  ;;  %s149_s28 = sshll.u32 %s1185_s27, 4  ;;  %s150_s28 = int_to_ptr.vmem [resolvable:$true] %s149_s28 }
   0xd   : > { %s1462_s25 = scalar_select %p1261_p8, 1, 0 }
   0xe   : > { %s1463_s26 = scalar_select %p1266_p10, 1, 0 }
   0xf   : > { %p944_p11 = pneg %p1266_p10  ;;  %p957_p13 = scmp.lt.s32.totalorder %s1183_s18, 3 }
  0x10   : > { %s1025_s7 = scalar_lea.hbm %s1452_s0, 1024 }
  0x11   : > { %p1274_p12 = pnand %p944_p11, %p1457_p5  ;;  %p1281_p0 = pnand %p957_p13, %p1252_p4 }
  0x12   : > { %p1026_p1 = scmp.ne.s32.totalorder %s1452_s0, %s1025_s7  ;;  %p1032_p4 = scmp.lt.u32.totalorder %s1025_s7, %s1452_s0 }
  0x13   : > { %s1465_s30 = scalar_select %p1281_p0, 1, 0 }
  0x14   : > { %p1027_p2 = pneg %p1274_p12 }
  0x16   : > { %p1028_p3 = pnand %p1027_p2, %p1026_p1 }
  0x18   : > { %p1029_p6 = pneg %p1028_p3 }
  0x1a   : > { %p1034_p7 = pnand %p1032_p4, %p1029_p6 }
  0x1c   : > { %1037 = shalt.err (!%p1034_p7)
}
  0x1d   : > { %s1038_s12 = scalar_lea.vmem %s150_s28, 1024  ;;  %p1046_p5 = scmp.lt.s32.totalorder %s150_s28, %s150_s28 }
  0x1e   : > { %p1039_p11 = scmp.ne.s32.totalorder %s150_s28, %s1038_s12  ;;  %p1047_p8 = scmp.lt.s32.totalorder %s1038_s12, %s1038_s12 }
  0x20   : > { %p1041_p13 = pnand %p1039_p11, %p1027_p2  ;;  %p1048_p10 = por %p1047_p8, %p1046_p5 }
  0x22   : > { %p1042_p9 = pneg %p1041_p13 }
  0x24   : > { %p1049_p0 = pnand %p1048_p10, %p1042_p9 }
  0x26   : > { %1052 = shalt.err (!%p1049_p0)
}
  0x27   : > { %s1186_s13 = smov 64   ;;  %s1187_s14 = smov 4  }
  0x28   : > { %947 = dma.hbm_to_vmem [thread:$0]  (!%p1274_p12), %s1452_s0, 1024, %s150_s28, [#allocation4], %s1186_s13, %s1186_s13, %s1187_s14  }
  0x29   : > { %s1188_s22 = smov [#allocation6]   ;;  %s176_s27 = sand.u32 1, %s1183_s18  }
  0x2a   : > { %s162_s24 = sshll.u32 %s1188_s22, 4  ;;  %s1053_s7 = scalar_lea.hbm %s1453_s1, 1024  ;;  %s163_s24 = int_to_ptr.vmem [resolvable:$true] %s162_s24 }
  0x2b   : > { %p1054_p5 = scmp.ne.s32.totalorder %s1453_s1, %s1053_s7  ;;  %p1060_p10 = scmp.lt.u32.totalorder %s1053_s7, %s1453_s1 }
  0x2d   : > { %p1056_p8 = pnand %p1054_p5, %p1027_p2 }
  0x2f   : > { %p1057_p9 = pneg %p1056_p8 }
  0x31   : > { %p1062_p0 = pnand %p1060_p10, %p1057_p9 }
  0x33   : > { %1065 = shalt.err (!%p1062_p0)
}
  0x34   : > { %s1066_s28 = scalar_lea.vmem %s163_s24, 1024  ;;  %p1074_p4 = scmp.lt.s32.totalorder %s163_s24, %s163_s24 }
  0x35   : > { %p1067_p1 = scmp.ne.s32.totalorder %s163_s24, %s1066_s28  ;;  %p1075_p7 = scmp.lt.s32.totalorder %s1066_s28, %s1066_s28 }
  0x37   : > { %p1069_p3 = pnand %p1067_p1, %p1027_p2  ;;  %p1076_p11 = por %p1075_p7, %p1074_p4 }
  0x39   : > { %p1070_p6 = pneg %p1069_p3 }
  0x3b   : > { %p1077_p13 = pnand %p1076_p11, %p1070_p6 }
  0x3d   : > { %1080 = shalt.err (!%p1077_p13)
}
  0x3e   : > { %950 = dma.hbm_to_vmem [thread:$0]  (!%p1274_p12), %s1453_s1, 1024, %s163_s24, [#allocation7], %s1186_s13, %s1186_s13, %s1187_s14  }
  0x3f   : > { %s178_s21 = sand.u32 1, %s1179_s17   ;;  %s833_s22 = sshll.u32 %s1183_s18, 10 }
  0x40   : > { %s795_s5 = sshll.u32 %s178_s21, 6  ;;  %s1339_s8 = scalar_lea.hbm %s1454_s2, %s833_s22 }
  0x41   : > { %s180_s29 = scalar_lea.vmem [#allocation8], %s795_s5  ;;  %s1343_s10 = scalar_lea.sflag [#allocation4], %s176_s27 }
  0x42   : > { %s187_s9 = sshll.u32 %s180_s29, 4  ;;  %s1081_s11 = scalar_lea.hbm %s1339_s8, 1024  ;;  %s1341_s9 = int_to_ptr.vmem [resolvable:$true] %s187_s9 }
  0x43   : > { %p1082_p12 = scmp.ne.s32.totalorder %s1339_s8, %s1081_s11  ;;  %p1466_p2 = scmp.ne.s32.totalorder %s1465_s30, 0 }
  0x44   : > { %s1086_s28 = scalar_lea.hbm %s1454_s2, 3072  ;;  %p1087_p10 = scmp.lt.u32.totalorder %s1339_s8, %s1454_s2 }
  0x45   : > { %p1083_p5 = pneg %p1466_p2  ;;  %p1088_p0 = scmp.lt.u32.totalorder %s1086_s28, %s1081_s11 }
  0x46   : > { %p1090_p3 = scmp.lt.u32.totalorder %s1081_s11, %s1339_s8 }
  0x47   : > { %p1084_p8 = pnand %p1083_p5, %p1082_p12  ;;  %p1089_p1 = por %p1088_p0, %p1087_p10 }
  0x49   : > { %p1085_p9 = pneg %p1084_p8  ;;  %p1091_p6 = por %p1090_p3, %p1089_p1 }
  0x4b   : > { %p1092_p4 = pnand %p1091_p6, %p1085_p9 }
  0x4d   : > { %1095 = shalt.err (!%p1092_p4)
}
  0x4e   : > { %s1096_s27 = scalar_lea.vmem %s1341_s9, 1024  ;;  %s1189_s21 = smov [#allocation8]  }
  0x4f   : > { %p1097_p7 = scmp.ne.s32.totalorder %s1341_s9, %s1096_s27  ;;  %s1101_s22 = sshll.u32 %s1189_s21, 4  ;;  %s1102_s22 = int_to_ptr.vmem [resolvable:$false] %s1101_s22 }
  0x50   : > { %s1103_s5 = scalar_lea.vmem %s1102_s22, 2048  ;;  %p1104_p12 = scmp.lt.s32.totalorder %s1341_s9, %s1102_s22 }
  0x51   : > { %p1099_p11 = pnand %p1097_p7, %p1083_p5  ;;  %p1105_p8 = scmp.lt.s32.totalorder %s1103_s5, %s1096_s27 }
  0x53   : > { %p1100_p13 = pneg %p1099_p11  ;;  %p1106_p10 = por %p1105_p8, %p1104_p12 }
  0x55   : > { %p1107_p0 = pnand %p1106_p10, %p1100_p13 }
  0x57   : > { %1110 = shalt.err (!%p1107_p0)
}
  0x58   : > { %954 = dma.hbm_to_vmem [thread:$0]  (!%p1466_p2), %s1339_s8, 1024, %s1341_s9, %s1343_s10, %s1186_s13, %s1186_s13, %s1187_s14  }
  0x59   : > { %p1467_p5 = scmp.ne.s32.totalorder %s1463_s26, 0 }
  0x5a   : > { %p1468_p9 = scmp.eq.s32.totalorder (!%p1467_p5), %s1237_s19, 0 }
  0x5b   : > { %205 = sbr.rel (%p1467_p5) target bundleno = 670 (0x29e), region = 36 }
  0x62   : > { %1154 = dma.done.wait (%p1468_p9), [#allocation4], 1024   ;;  %p1469_p1 = pmov %p1468_p9 }
  0x64   : > { %1156 = vsyncadd (%p1469_p1), [#allocation4], 4294966272  ;;  %p1470_p3 = pmov %p1469_p1 }
  0x65   : > { %p1471_p6 = pmov %p1469_p1 }
  0x66   : > { %1158 = dma.done.wait (%p1470_p3), [#allocation7], 1024  }
  0x67   : > { %1160 = vsyncadd (%p1471_p6), [#allocation7], 4294966272  ;;  %s215_s30 = sand.u32 1, %s1237_s19   ;;  %s217_s13 = sand.u32 1, %s1175_s16  }
  0x68   : > { %s801_s14 = sshll.u32 %s217_s13, 6  ;;  %s216_s26 = scalar_lea.sflag [#allocation4], %s215_s30 }
  0x69   : > { %s1386_s6 = scalar_lea.vmem [#allocation8], %s801_s14  ;;  %p1472_p2 = scmp.ne.s32.totalorder %s1462_s25, 0 }
  0x6b   : > { %1162 = dma.done.wait (%p1472_p2), %s216_s26, 1024  }
  0x6c   : > { %1164 = vsyncadd (%p1472_p2), %s216_s26, 4294966272  ;;  %p242_p4 = scmp.lt.s32.totalorder %s1237_s19, 2  ;;  %p1473_p7 = scmp.ne.s32.totalorder %s1237_s19, 0 }
  0x6d   : > { %v1001_v0 = vld [vmem:[#allocation6] sm:$0xff] (!%p1473_p7)   ;;  %v1002_v1 = vld [vmem:[#allocation6 + $0x8] sm:$0xff] (!%p1473_p7)   ;;  %v1003_v2 = vld [vmem:[#allocation6 + $0x10] sm:$0xff] (!%p1473_p7)  }
  0x6e   : > { %s1394_s7 = scalar_select %p242_p4, %s1237_s19, 2 }
  0x6f   : > { %249 = sbr.rel (%p1473_p7) target bundleno = 118 (0x76), region = 52  ;;  %314 = vst [vmem:[#allocation2] sm:$0xff] (!%p1473_p7), %v1001_v0  ;;  %315 = vst [vmem:[#allocation2 + $0x8] sm:$0xff] (!%p1473_p7), %v1002_v1  ;;  %v1004_v3 = vld [vmem:[#allocation6 + $0x18] sm:$0xff] (!%p1473_p7)   ;;  %v1005_v4 = vld [vmem:[#allocation6 + $0x20] sm:$0xff] (!%p1473_p7)  }
  0x70   : > { %s244_s9 = scalar_lea.vmem %s1455_s3, %s1394_s7  ;;  %316 = vst [vmem:[#allocation2 + $0x10] sm:$0xff] (!%p1473_p7), %v1003_v2  ;;  %317 = vst [vmem:[#allocation2 + $0x18] sm:$0xff] (!%p1473_p7), %v1004_v3  ;;  %v1006_v5 = vld [vmem:[#allocation6 + $0x28] sm:$0xff] (!%p1473_p7)   ;;  %v1007_v6 = vld [vmem:[#allocation6 + $0x30] sm:$0xff] (!%p1473_p7)  }
  0x71   : > { %318 = vst [vmem:[#allocation2 + $0x20] sm:$0xff] (!%p1473_p7), %v1005_v4  ;;  %319 = vst [vmem:[#allocation2 + $0x28] sm:$0xff] (!%p1473_p7), %v1006_v5  ;;  %v1008_v7 = vld [vmem:[#allocation6 + $0x38] sm:$0xff] (!%p1473_p7)  }
  0x72   : > { %320 = vst [vmem:[#allocation2 + $0x30] sm:$0xff] (!%p1473_p7), %v1007_v6  ;;  %321 = vst [vmem:[#allocation2 + $0x38] sm:$0xff] (!%p1473_p7), %v1008_v7 }
  0x76 PF: > { %v1009_v8 = vld [vmem:[%s1386_s6] sm:$0xff]   ;;  %v1010_v9 = vld [vmem:[%s1386_s6 + $0x8] sm:$0xff]   ;;  %v1011_v10 = vld [vmem:[%s1386_s6 + $0x10] sm:$0xff]   ;;  %p828_p11 = scmp.ne.s32.totalorder %s1237_s19, 2 }
  0x77   : > { %866 = vmatprep.subr.bf16.mxu0 %v1009_v8  ;;  %v1012_v11 = vld [vmem:[%s1386_s6 + $0x18] sm:$0xff]   ;;  %v322_v12 = vld [vmem:[#allocation2] sm:$0xff]  ;;  %v1014_v14 = vld [vmem:[%s1386_s6 + $0x28] sm:$0xff]  }
  0x78   : > { %867 = vmatpush3.bf16.msra.mxu0 %v1009_v8  ;;  %882 = vmatprep.mubr.bf16.mxu0 %v322_v12  ;;  %v1013_v13 = vld [vmem:[%s1386_s6 + $0x20] sm:$0xff]   ;;  %v1015_v15 = vld [vmem:[%s1386_s6 + $0x30] sm:$0xff]   ;;  %v1016_v16 = vld [vmem:[%s1386_s6 + $0x38] sm:$0xff]  }
  0x79   : > { %868 = vmatprep.subr.bf16.mxu0 %v1010_v9  ;;  %v323_v17 = vld [vmem:[#allocation2 + $0x8] sm:$0xff]  ;;  %v324_v18 = vld [vmem:[#allocation2 + $0x10] sm:$0xff]  ;;  %v325_v19 = vld [vmem:[#allocation2 + $0x18] sm:$0xff] }
  0x7a   : > { %v326_v20 = vld [vmem:[#allocation2 + $0x20] sm:$0xff]  ;;  %v327_v21 = vld [vmem:[#allocation2 + $0x28] sm:$0xff]  ;;  %v328_v22 = vld [vmem:[#allocation2 + $0x30] sm:$0xff] }
  0x7b   : > { %v329_v23 = vld [vmem:[#allocation2 + $0x38] sm:$0xff]  ;;  %v1017_v24 = vld [vmem:[#allocation3] sm:$0xff]   ;;  %v1018_v49 = vld [vmem:[#allocation3 + $0x8] sm:$0xff]  }
  0x7c   : > { %869 = vmatpush3.bf16.msra.mxu0 %v1010_v9  ;;  %914 = vmatprep.mubr.bf16.mxu1 %v1017_v24  ;;  %v1019_v50 = vld [vmem:[#allocation3 + $0x10] sm:$0xff]   ;;  %v1020_v51 = vld [vmem:[#allocation3 + $0x18] sm:$0xff]   ;;  %v1021_v52 = vld [vmem:[#allocation3 + $0x20] sm:$0xff]  }
  0x7d   : > { %870 = vmatprep.subr.bf16.mxu0 %v1011_v10  ;;  %v1022_v53 = vld [vmem:[#allocation3 + $0x28] sm:$0xff]   ;;  %v1023_v54 = vld [vmem:[#allocation3 + $0x30] sm:$0xff]   ;;  %v1024_v55 = vld [vmem:[#allocation3 + $0x38] sm:$0xff]  }
  0x7e   : > { %v819_v57 = vld [vmem:[%s244_s9] ss:$0 sm:$0xff] }
  0x80   : > { %871 = vmatpush3.bf16.msra.mxu0 %v1011_v10 }
  0x81   : > { %872 = vmatprep.subr.bf16.mxu0 %v1012_v11 }
  0x84   : > { %873 = vmatpush3.bf16.msra.mxu0 %v1012_v11 }
  0x85   : > { %874 = vmatprep.subr.bf16.mxu0 %v1013_v13 }
  0x88   : > { %875 = vmatpush3.bf16.msra.mxu0 %v1013_v13 }
  0x89   : > { %876 = vmatprep.subr.bf16.mxu0 %v1014_v14 }
  0x8c   : > { %877 = vmatpush3.bf16.msra.mxu0 %v1014_v14 }
  0x8d   : > { %878 = vmatprep.subr.bf16.mxu0 %v1015_v15 }
  0x90   : > { %879 = vmatpush3.bf16.msra.mxu0 %v1015_v15 }
  0x91   : > { %880 = vmatprep.subr.bf16.mxu0 %v1016_v16 }
  0x94   : > { %881 = vmatpush3.bf16.msra.mxu0 %v1016_v16 }
  0x97   : > { %883 = vmatmul.mubr.bf16.vlgmr.msra.gmra.mrb[0].mxu0 %v323_v17 }
  0x98   : > { %886 = vmatprep.mubr.bf16.mxu0 %v324_v18 }
  0x9f   : > { %887 = vmatmul.mubr.bf16.gmra.mrb[4].mxu0 %v325_v19 }
  0xa0   : > { %890 = vmatprep.mubr.bf16.mxu0 %v326_v20 }
  0xa7   : > { %891 = vmatmul.mubr.bf16.gmra.mrb[8].mxu0 %v327_v21 }
  0xa8   : > { %894 = vmatprep.mubr.bf16.mxu0 %v328_v22 }
  0xaf   : > { %895 = vmatmul.mubr.bf16.gmra.mrb[12].mxu0 %v329_v23 }
 0x16a   : > { %v884_v25 = vpop.f32.mrb[0].mxu0 }
 0x16b   : > { %v428_v26 = vpop.f32.mrb[1].mxu0 }
 0x16c   : > { %v885_v27 = vpop.f32.mrb[2].mxu0 }
 0x16d   : > { %v508_v28 = vpack.c.bf16 %v885_v27, %v884_v25  ;;  %v431_v29 = vpop.f32.mrb[3].mxu0 }
 0x16e   : > { %v507_v30 = vpack.c.bf16 %v431_v29, %v428_v26 }
 0x170   : > { %898 = vmatprep.subr.bf16.mxu1 %v507_v30 }
 0x171   : > { %899 = vmatpush3.bf16.msra.mxu1 %v507_v30 }
 0x172   : > { %v888_v31 = vpop.f32.mrb[4].mxu0  ;;  %900 = vmatprep.subr.bf16.mxu1 %v508_v28 }
 0x173   : > { %v444_v32 = vpop.f32.mrb[5].mxu0 }
 0x174   : > { %v889_v33 = vpop.f32.mrb[6].mxu0 }
 0x175   : > { %v510_v34 = vpack.c.bf16 %v889_v33, %v888_v31  ;;  %v447_v35 = vpop.f32.mrb[7].mxu0  ;;  %901 = vmatpush3.bf16.msra.mxu1 %v508_v28 }
 0x176   : > { %v509_v36 = vpack.c.bf16 %v447_v35, %v444_v32 }
 0x178   : > { %902 = vmatprep.subr.bf16.mxu1 %v509_v36 }
 0x179   : > { %903 = vmatpush3.bf16.msra.mxu1 %v509_v36 }
 0x17a   : > { %v892_v37 = vpop.f32.mrb[8].mxu0  ;;  %904 = vmatprep.subr.bf16.mxu1 %v510_v34 }
 0x17b   : > { %v460_v38 = vpop.f32.mrb[9].mxu0 }
 0x17c   : > { %v893_v39 = vpop.f32.mrb[10].mxu0 }
 0x17d   : > { %v512_v40 = vpack.c.bf16 %v893_v39, %v892_v37  ;;  %v463_v41 = vpop.f32.mrb[11].mxu0  ;;  %905 = vmatpush3.bf16.msra.mxu1 %v510_v34 }
 0x17e   : > { %v511_v42 = vpack.c.bf16 %v463_v41, %v460_v38 }
 0x180   : > { %906 = vmatprep.subr.bf16.mxu1 %v511_v42 }
 0x181   : > { %907 = vmatpush3.bf16.msra.mxu1 %v511_v42 }
 0x182   : > { %v896_v43 = vpop.f32.mrb[12].mxu0  ;;  %908 = vmatprep.subr.bf16.mxu1 %v512_v40 }
 0x183   : > { %v476_v44 = vpop.f32.mrb[13].mxu0 }
 0x184   : > { %v897_v45 = vpop.f32.mrb[14].mxu0 }
 0x185   : > { %v514_v46 = vpack.c.bf16 %v897_v45, %v896_v43  ;;  %v479_v47 = vpop.f32.mrb[15].mxu0  ;;  %909 = vmatpush3.bf16.msra.mxu1 %v512_v40 }
 0x186   : > { %v513_v48 = vpack.c.bf16 %v479_v47, %v476_v44 }
 0x188   : > { %910 = vmatprep.subr.bf16.mxu1 %v513_v48 }
 0x189   : > { %911 = vmatpush3.bf16.msra.mxu1 %v513_v48 }
 0x18a   : > { %912 = vmatprep.subr.bf16.mxu1 %v514_v46 }
 0x18d   : > { %913 = vmatpush3.bf16.msra.mxu1 %v514_v46 }
 0x190   : > { %915 = vmatmul.mubr.bf16.vlgmr.msra.gmra.mrb[0].mxu1 %v1018_v49 }
 0x191   : > { %918 = vmatprep.mubr.bf16.mxu1 %v1019_v50 }
 0x198   : > { %919 = vmatmul.mubr.bf16.gmra.mrb[4].mxu1 %v1020_v51 }
 0x199   : > { %922 = vmatprep.mubr.bf16.mxu1 %v1021_v52 }
 0x1a0   : > { %923 = vmatmul.mubr.bf16.gmra.mrb[8].mxu1 %v1022_v53 }
 0x1a1   : > { %926 = vmatprep.mubr.bf16.mxu1 %v1023_v54 }
 0x1a8   : > { %927 = vmatmul.mubr.bf16.gmra.mrb[12].mxu1 %v1024_v55 }
 0x263   : > { %v916_v56 = vpop.f32.mrb[0].mxu1 }
 0x264   : > { %v604_v58 = vpop.f32.mrb[1].mxu1  ;;  %v613_v60 = vadd.f32 %v916_v56, %v819_v57 }
 0x265   : > { %v917_v59 = vpop.f32.mrb[2].mxu1  ;;  %v605_v63 = vadd.f32 %v819_v57, %v604_v58 }
 0x266   : > { %v616_v61 = vadd.f32 %v917_v59, %v819_v57  ;;  %v607_v62 = vpop.f32.mrb[3].mxu1  ;;  %689 = vst [vmem:[#allocation9 + $0x10] sm:$0xff] (!%p828_p11), %v613_v60 }
 0x267   : > { %v608_v0 = vadd.f32 %v819_v57, %v607_v62  ;;  %687 = vst [vmem:[#allocation9] sm:$0xff] (!%p828_p11), %v605_v63 }
 0x268   : > { %v668_v1 = vpack.c.bf16 %v616_v61, %v613_v60  ;;  %690 = vst [vmem:[#allocation9 + $0x18] sm:$0xff] (!%p828_p11), %v616_v61 }
 0x269   : > { %v667_v2 = vpack.c.bf16 %v608_v0, %v605_v63  ;;  %688 = vst [vmem:[#allocation9 + $0x8] sm:$0xff] (!%p828_p11), %v608_v0 }
 0x26a   : > { %676 = vst [vmem:[#allocation2 + $0x8] sm:$0xff] %v668_v1 }
 0x26b   : > { %675 = vst [vmem:[#allocation2] sm:$0xff] %v667_v2  ;;  %v920_v3 = vpop.f32.mrb[4].mxu1 }
 0x26c   : > { %v620_v4 = vpop.f32.mrb[5].mxu1  ;;  %v629_v6 = vadd.f32 %v920_v3, %v819_v57 }
 0x26d   : > { %v921_v5 = vpop.f32.mrb[6].mxu1  ;;  %v621_v9 = vadd.f32 %v819_v57, %v620_v4 }
 0x26e   : > { %v632_v7 = vadd.f32 %v921_v5, %v819_v57  ;;  %v623_v8 = vpop.f32.mrb[7].mxu1  ;;  %693 = vst [vmem:[#allocation9 + $0x30] sm:$0xff] (!%p828_p11), %v629_v6 }
 0x26f   : > { %v624_v10 = vadd.f32 %v819_v57, %v623_v8  ;;  %691 = vst [vmem:[#allocation9 + $0x20] sm:$0xff] (!%p828_p11), %v621_v9 }
 0x270   : > { %v670_v11 = vpack.c.bf16 %v632_v7, %v629_v6  ;;  %694 = vst [vmem:[#allocation9 + $0x38] sm:$0xff] (!%p828_p11), %v632_v7 }
 0x271   : > { %v669_v12 = vpack.c.bf16 %v624_v10, %v621_v9  ;;  %692 = vst [vmem:[#allocation9 + $0x28] sm:$0xff] (!%p828_p11), %v624_v10 }
 0x272   : > { %678 = vst [vmem:[#allocation2 + $0x18] sm:$0xff] %v670_v11 }
 0x273   : > { %677 = vst [vmem:[#allocation2 + $0x10] sm:$0xff] %v669_v12  ;;  %v924_v13 = vpop.f32.mrb[8].mxu1 }
 0x274   : > { %v636_v14 = vpop.f32.mrb[9].mxu1  ;;  %v645_v16 = vadd.f32 %v924_v13, %v819_v57 }
 0x275   : > { %v925_v15 = vpop.f32.mrb[10].mxu1  ;;  %v637_v19 = vadd.f32 %v819_v57, %v636_v14 }
 0x276   : > { %v648_v17 = vadd.f32 %v925_v15, %v819_v57  ;;  %v639_v18 = vpop.f32.mrb[11].mxu1  ;;  %697 = vst [vmem:[#allocation9 + $0x50] sm:$0xff] (!%p828_p11), %v645_v16 }
 0x277   : > { %v640_v20 = vadd.f32 %v819_v57, %v639_v18  ;;  %695 = vst [vmem:[#allocation9 + $0x40] sm:$0xff] (!%p828_p11), %v637_v19 }
 0x278   : > { %v672_v21 = vpack.c.bf16 %v648_v17, %v645_v16  ;;  %698 = vst [vmem:[#allocation9 + $0x58] sm:$0xff] (!%p828_p11), %v648_v17 }
 0x279   : > { %v671_v22 = vpack.c.bf16 %v640_v20, %v637_v19  ;;  %696 = vst [vmem:[#allocation9 + $0x48] sm:$0xff] (!%p828_p11), %v640_v20 }
 0x27a   : > { %680 = vst [vmem:[#allocation2 + $0x28] sm:$0xff] %v672_v21 }
 0x27b   : > { %679 = vst [vmem:[#allocation2 + $0x20] sm:$0xff] %v671_v22  ;;  %v928_v23 = vpop.f32.mrb[12].mxu1 }
 0x27c   : > { %v652_v24 = vpop.f32.mrb[13].mxu1  ;;  %v661_v26 = vadd.f32 %v928_v23, %v819_v57 }
 0x27d   : > { %v929_v25 = vpop.f32.mrb[14].mxu1  ;;  %v653_v29 = vadd.f32 %v819_v57, %v652_v24  ;;  %686 = sbr.rel (%p828_p11) target bundleno = 644 (0x284), region = 56 }
 0x27e   : > { %v664_v27 = vadd.f32 %v929_v25, %v819_v57  ;;  %v655_v28 = vpop.f32.mrb[15].mxu1  ;;  %701 = vst [vmem:[#allocation9 + $0x70] sm:$0xff] (!%p828_p11), %v661_v26 }
 0x27f   : > { %v656_v30 = vadd.f32 %v819_v57, %v655_v28  ;;  %699 = vst [vmem:[#allocation9 + $0x60] sm:$0xff] (!%p828_p11), %v653_v29 }
 0x280   : > { %v674_v31 = vpack.c.bf16 %v664_v27, %v661_v26  ;;  %702 = vst [vmem:[#allocation9 + $0x78] sm:$0xff] (!%p828_p11), %v664_v27 }
 0x281   : > { %v673_v32 = vpack.c.bf16 %v656_v30, %v653_v29  ;;  %700 = vst [vmem:[#allocation9 + $0x68] sm:$0xff] (!%p828_p11), %v656_v30 }
 0x282   : > { %682 = vst [vmem:[#allocation2 + $0x38] sm:$0xff] %v674_v31 }
 0x283   : > { %681 = vst [vmem:[#allocation2 + $0x30] sm:$0xff] %v673_v32 }
 0x284 PF: > { %p960_p13 = scmp.eq.s32.totalorder %s1237_s19, 2  ;;  %s1190_s11 = smov [#allocation9]  }
 0x285   : > { %s709_s18 = sshll.u32 %s1190_s11, 4  ;;  %s710_s18 = int_to_ptr.vmem [resolvable:$true] %s709_s18 }
 0x286   : > { %s1111_s24 = scalar_lea.vmem %s710_s18, 2048  ;;  %p1118_p0 = scmp.lt.s32.totalorder %s710_s18, %s710_s18 }
 0x287   : > { %p1112_p12 = scmp.ne.s32.totalorder %s710_s18, %s1111_s24  ;;  %p1119_p5 = scmp.lt.s32.totalorder %s1111_s24, %s1111_s24 }
 0x289   : > { %p1113_p8 = pnand %p1112_p12, %p960_p13  ;;  %p1120_p9 = por %p1119_p5, %p1118_p0 }
 0x28b   : > { %p1114_p10 = pneg %p1113_p8 }
 0x28d   : > { %p1121_p1 = pnand %p1120_p9, %p1114_p10 }
 0x28f   : > { %1124 = shalt.err (!%p1121_p1)
}
 0x290   : > { %s1125_s15 = scalar_lea.hbm %s1456_s4, 2048 }
 0x291   : > { %p1126_p3 = scmp.ne.s32.totalorder %s1456_s4, %s1125_s15  ;;  %p1131_p4 = scmp.lt.u32.totalorder %s1125_s15, %s1456_s4 }
 0x293   : > { %p1127_p6 = pnand %p1126_p3, %p960_p13 }
 0x295   : > { %p1128_p2 = pneg %p1127_p6 }
 0x297   : > { %p1133_p7 = pnand %p1131_p4, %p1128_p2 }
 0x299   : > { %1136 = shalt.err (!%p1133_p7)
}
 0x29a   : > { %s1191_s30 = smov 128   ;;  %s1192_s13 = smov 8  }
 0x29b   : > { %941 = dma.vmem_to_hbm [thread:$0]  (%p960_p13), %s710_s18, 2048, %s1456_s4, [#allocation5], %s1191_s30, %s1191_s30, %s1192_s13  }
 0x29c   : > { %1166 = dma.done.wait (%p960_p13), [#allocation5], 2048  }
 0x29d   : > { %1168 = vsyncadd (%p960_p13), [#allocation5], 4294965248 }
 0x29e PF: > { %p14_p11 = scmp.ge.s32.totalorder %s1240_s20, 5   ;;  %s1474_s15 = smov %s1175_s16 }
 0x29f   : > { %s1475_s16 = smov %s1179_s17  ;;  %s1476_s17 = smov %s1250_s23 }
 0x2a0   : > { %s1477_s18 = smov %s1240_s20  ;;  %16 = sbr.rel (!%p14_p11) target bundleno = 4 (0x4), region = 91 }
 0x2a7   :  { %725 = vsyncpa [#allocation4], 1 }
 0x2a8   :  { %727 = vsyncpa [#allocation4 + $0x1], 1 }
 0x2a9   :  { %728 = vsyncpa [#allocation7], 1 }
 0x2aa   :  { %729 = vsyncpa [#allocation5], 1 }
 0x2ab   :  { %731 = vsyncpa [#allocation5 + $0x1], 1 }

</bundles_post_ra>
